<compile_context>
chip_gen: v5e
topology: v5e:2x2
jax: 0.10.0
libtpu: 0.0.40
codegen_flags: <defaults>
</compile_context>

<pallas_src>
import jax
import jax.numpy as jnp
from jax.experimental import pallas as pl
from jax.experimental.pallas import tpu as pltpu


def two_layer_kernel(x_ref, w1_ref, b1_ref, w2_ref, b2_ref, y_ref):
    # In-kernel f32 -> bf16 cast (VPU), bf16 MXU matmuls, f32 accumulation.
    x = x_ref[...].astype(jnp.bfloat16)
    h = jnp.dot(x, w1_ref[...], preferred_element_type=jnp.float32)
    h = jnp.maximum(h + b1_ref[...], 0.0)                      # bias + clamp(min=0)
    y = jnp.dot(h.astype(jnp.bfloat16), w2_ref[...],
                preferred_element_type=jnp.float32)
    y_ref[...] = (y + b2_ref[...]).astype(y_ref.dtype)


def _round_up(v, m):
    return (v + m - 1) // m * m


def prepare_params(w1, b1, w2, b2):
    """One-time (outside the per-call path) pad-to-lane-multiples + bf16 cast.

    w1:(D_in,H), b1:(1,H), w2:(H,D_out), b2:(1,D_out)  ->  padded arrays with
    H and D_out rounded up to 128 lanes.  K (=D_in) is left unpadded.
    """
    D_in, H = w1.shape
    D_out = w2.shape[1]
    H_p = _round_up(H, 128)
    D_out_p = _round_up(D_out, 128)

    w1_p = jnp.zeros((D_in, H_p), jnp.bfloat16).at[:, :H].set(
        w1.astype(jnp.bfloat16))
    b1_p = jnp.zeros((1, H_p), jnp.float32).at[:, :H].set(b1.astype(jnp.float32))
    w2_p = jnp.zeros((H_p, D_out_p), jnp.bfloat16).at[:H, :D_out].set(
        w2.astype(jnp.bfloat16))
    b2_p = jnp.zeros((1, D_out_p), jnp.float32).at[:, :D_out].set(
        b2.astype(jnp.float32))
    return w1_p, b1_p, w2_p, b2_p


def _choose_block_n(n_pad, cap):
    """Largest multiple-of-8 divisor of n_pad that is <= cap (n_pad % 8 == 0)."""
    b = min(n_pad, cap)
    b -= b % 8
    while b > 8 and n_pad % b != 0:
        b -= 8
    return b


def two_layer_net(x, w1_p, b1_p, w2_p, b2_p, *, d_out, block_cap=512):
    """x:(N,D_in) f32 (unpadded); padded params from prepare_params; d_out static."""
    N, D_in = x.shape
    H_p = w1_p.shape[1]
    D_out_p = w2_p.shape[1]

    if N <= block_cap:
        # Single block equal to the full batch: legal regardless of N % 8,
        # grid degenerates to one step, zero batch padding.
        block_n, N_p = N, N
    else:
        N_p = _round_up(N, 8)                 # at most 7 dead rows
        block_n = _choose_block_n(N_p, block_cap)

    if N_p != N:
        x = jnp.zeros((N_p, D_in), x.dtype).at[:N].set(x)

    grid = (N_p // block_n,)

    flops = 2 * N_p * (D_in * H_p + H_p * D_out_p)
    bytes_accessed = (N_p * D_in * 4 + w1_p.size * 2 + w2_p.size * 2
                      + b1_p.size * 4 + b2_p.size * 4 + N_p * D_out_p * 4)

    y_p = pl.pallas_call(
        two_layer_kernel,
        out_shape=jax.ShapeDtypeStruct((N_p, D_out_p), jnp.float32),
        grid_spec=pltpu.PrefetchScalarGridSpec(
            num_scalar_prefetch=0,
            grid=grid,
            in_specs=[
                # x tile: full-width last dim (D_in), cast to bf16 in-kernel.
                pl.BlockSpec((block_n, D_in), lambda i: (i, 0)),
                pl.BlockSpec((D_in, H_p), lambda i: (0, 0)),       # W1 resident
                pl.BlockSpec((1, H_p), lambda i: (0, 0)),          # b1 resident
                pl.BlockSpec((H_p, D_out_p), lambda i: (0, 0)),    # W2 resident
                pl.BlockSpec((1, D_out_p), lambda i: (0, 0)),      # b2 resident
            ],
            out_specs=pl.BlockSpec((block_n, D_out_p), lambda i: (i, 0)),
        ),
        compiler_params=pltpu.CompilerParams(
            dimension_semantics=("parallel",),   # engages multi-TC only when grid > 1
            vmem_limit_bytes=32 << 20,           # safe on all generations incl. v7x 64 MiB
        ),
        cost_estimate=pl.CostEstimate(
            flops=flops, transcendentals=0, bytes_accessed=bytes_accessed),
    )(x, w1_p, b1_p, w2_p, b2_p)

    return y_p[:N, :d_out]


if __name__ == "__main__":
    # Shapes from the PyTorch script.
    N, D_in, H, D_out = 64, 1000, 100, 10

    key = jax.random.PRNGKey(0)
    kx, k1, kb1, k2, kb2 = jax.random.split(key, 5)

    x = jax.random.normal(kx, (N, D_in), dtype=jnp.float32)

    # Deterministic init mimicking torch.nn.Linear's uniform(-1/sqrt(fan_in), ...)
    lim1 = 1.0 / jnp.sqrt(jnp.float32(D_in))
    w1 = jax.random.uniform(k1, (D_in, H), jnp.float32, -lim1, lim1)   # linear1.weight^T
    b1 = jax.random.uniform(kb1, (1, H), jnp.float32, -lim1, lim1)     # linear1.bias

    lim2 = 1.0 / jnp.sqrt(jnp.float32(H))
    w2 = jax.random.uniform(k2, (H, D_out), jnp.float32, -lim2, lim2)  # linear2.weight^T
    b2 = jax.random.uniform(kb2, (1, D_out), jnp.float32, -lim2, lim2) # linear2.bias

    # One-time parameter prep (pad + bf16 cast) outside the per-call path.
    params = jax.tree_util.tree_map(
        jax.block_until_ready, prepare_params(w1, b1, w2, b2))

    fwd = jax.jit(two_layer_net, static_argnames=("d_out",))
    y = fwd(x, *params, d_out=D_out)
    jax.block_until_ready(y)
    assert y.shape == (N, D_out)

    # Reference 1: same bf16-input / f32-accumulate recipe in plain JAX.
    h_ref = jnp.dot(x.astype(jnp.bfloat16), w1.astype(jnp.bfloat16),
                    preferred_element_type=jnp.float32) + b1
    y_ref_bf16 = jnp.dot(jnp.maximum(h_ref, 0.0).astype(jnp.bfloat16),
                         w2.astype(jnp.bfloat16),
                         preferred_element_type=jnp.float32) + b2
    assert jnp.allclose(y, y_ref_bf16, atol=1e-3, rtol=1e-3)

    # Reference 2: full-f32 PyTorch-equivalent math (loose tol for bf16 MXU inputs).
    y_ref_f32 = jnp.maximum(x @ w1 + b1, 0.0) @ w2 + b2
    assert jnp.allclose(y, y_ref_f32, atol=2e-2, rtol=2e-2)

    print("KERNEL_OK")
</pallas_src>

<mosaic_0001>
module attributes {stable_mosaic.version = 11 : i64} {
  func.func @two_layer_kernel(%arg0: i32, %arg1: memref<64x1000xf32, #tpu.memory_space<vmem>>, %arg2: memref<1000x128xbf16, #tpu.memory_space<vmem>>, %arg3: memref<1x128xf32, #tpu.memory_space<vmem>>, %arg4: memref<128x128xbf16, #tpu.memory_space<vmem>>, %arg5: memref<1x128xf32, #tpu.memory_space<vmem>>, %arg6: memref<64x128xf32, #tpu.memory_space<vmem>>) attributes {dimension_semantics = [#tpu.dimension_semantics<parallel>], iteration_bounds = array<i64: 1>, scalar_prefetch = 0 : i64, scratch_operands = 0 : i64, tpu.core_type = #tpu.core_type<tc>, window_params = [{transform_indices = @transform_0, window_bounds = array<i64: 64, 1000>}, {pipeline_mode = #tpu.pipeline_mode<synchronous>, transform_indices = @transform_1, window_bounds = array<i64: 1000, 128>}, {pipeline_mode = #tpu.pipeline_mode<synchronous>, transform_indices = @transform_2, window_bounds = array<i64: 1, 128>}, {pipeline_mode = #tpu.pipeline_mode<synchronous>, transform_indices = @transform_3, window_bounds = array<i64: 128, 128>}, {pipeline_mode = #tpu.pipeline_mode<synchronous>, transform_indices = @transform_4, window_bounds = array<i64: 1, 128>}, {transform_indices = @transform_5, window_bounds = array<i64: 64, 128>}]} {
    %c0 = arith.constant 0 : index
    %c0_0 = arith.constant 0 : index
    %0 = vector.load %arg1[%c0, %c0_0] : memref<64x1000xf32, #tpu.memory_space<vmem>>, vector<64x1000xf32>
    %1 = arith.truncf %0 : vector<64x1000xf32> to vector<64x1000xbf16>
    %c0_1 = arith.constant 0 : index
    %c0_2 = arith.constant 0 : index
    %2 = vector.load %arg2[%c0_1, %c0_2] : memref<1000x128xbf16, #tpu.memory_space<vmem>>, vector<1000x128xbf16>
    %cst = arith.constant dense<0.000000e+00> : vector<64x128xf32>
    %3 = tpu.matmul %1, %2, %cst {dimension_numbers = #tpu.dot_dimension_numbers<[1], [0], [0], [1], [0, 0, 1, 1], [], []>} : vector<64x1000xbf16>, vector<1000x128xbf16>, vector<64x128xf32> -> vector<64x128xf32>
    %c0_3 = arith.constant 0 : index
    %c0_4 = arith.constant 0 : index
    %4 = vector.load %arg3[%c0_3, %c0_4] : memref<1x128xf32, #tpu.memory_space<vmem>>, vector<1x128xf32>
    %5 = vector.broadcast %4 : vector<1x128xf32> to vector<64x128xf32>
    %6 = arith.addf %3, %5 : vector<64x128xf32>
    %cst_5 = arith.constant 0.000000e+00 : f32
    %7 = vector.broadcast %cst_5 : f32 to vector<64x128xf32>
    %8 = arith.maximumf %6, %7 : vector<64x128xf32>
    %9 = arith.truncf %8 : vector<64x128xf32> to vector<64x128xbf16>
    %c0_6 = arith.constant 0 : index
    %c0_7 = arith.constant 0 : index
    %10 = vector.load %arg4[%c0_6, %c0_7] : memref<128x128xbf16, #tpu.memory_space<vmem>>, vector<128x128xbf16>
    %cst_8 = arith.constant dense<0.000000e+00> : vector<64x128xf32>
    %11 = tpu.matmul %9, %10, %cst_8 {dimension_numbers = #tpu.dot_dimension_numbers<[1], [0], [0], [1], [0, 0, 1, 1], [], []>} : vector<64x128xbf16>, vector<128x128xbf16>, vector<64x128xf32> -> vector<64x128xf32>
    %c0_9 = arith.constant 0 : index
    %c0_10 = arith.constant 0 : index
    %12 = vector.load %arg5[%c0_9, %c0_10] : memref<1x128xf32, #tpu.memory_space<vmem>>, vector<1x128xf32>
    %13 = vector.broadcast %12 : vector<1x128xf32> to vector<64x128xf32>
    %14 = arith.addf %11, %13 : vector<64x128xf32>
    %c0_11 = arith.constant 0 : index
    %c0_12 = arith.constant 0 : index
    %15 = vector.load %arg6[%c0_11, %c0_12] : memref<64x128xf32, #tpu.memory_space<vmem>>, vector<64x128xf32>
    tpu.vector_store %arg6[%c0_11, %c0_12], %14 {strides = array<i32>} : memref<64x128xf32, #tpu.memory_space<vmem>>, vector<64x128xf32>,
    return
  }
  func.func @transform_0(%arg0: i32) -> (i32, i32) {
    %c0_i32 = arith.constant 0 : i32
    %c0_i32_0 = arith.constant 0 : i32
    return %arg0, %c0_i32 : i32, i32
  }
  func.func @transform_1(%arg0: i32) -> (i32, i32) {
    %c0_i32 = arith.constant 0 : i32
    %c0_i32_0 = arith.constant 0 : i32
    %c0_i32_1 = arith.constant 0 : i32
    return %c0_i32, %c0_i32_0 : i32, i32
  }
  func.func @transform_2(%arg0: i32) -> (i32, i32) {
    %c0_i32 = arith.constant 0 : i32
    %c0_i32_0 = arith.constant 0 : i32
    %c0_i32_1 = arith.constant 0 : i32
    return %c0_i32, %c0_i32_0 : i32, i32
  }
  func.func @transform_3(%arg0: i32) -> (i32, i32) {
    %c0_i32 = arith.constant 0 : i32
    %c0_i32_0 = arith.constant 0 : i32
    %c0_i32_1 = arith.constant 0 : i32
    return %c0_i32, %c0_i32_0 : i32, i32
  }
  func.func @transform_4(%arg0: i32) -> (i32, i32) {
    %c0_i32 = arith.constant 0 : i32
    %c0_i32_0 = arith.constant 0 : i32
    %c0_i32_1 = arith.constant 0 : i32
    return %c0_i32, %c0_i32_0 : i32, i32
  }
  func.func @transform_5(%arg0: i32) -> (i32, i32) {
    %c0_i32 = arith.constant 0 : i32
    %c0_i32_0 = arith.constant 0 : i32
    return %arg0, %c0_i32 : i32, i32
  }
}

</mosaic_0001>

<bundles_post_ra>
// kernel: two_layer_net.1
= control target key start
LH: loop header
LB: loop body
LE: loop exit
PB: predicated region body
PF: predicated region fallthrough
CT: control target
= control target key end

     0   :  { %10 = vsyncpa [#allocation3], 0  ;;  %s1631_s0 = inlined_call_operand.hbm [shape: f32[64,1000], index: 0, kind: input, shape index: {}]   ;;  %s1632_s1 = inlined_call_operand.hbm [shape: bf16[1000,128], index: 1, kind: input, shape index: {}]   ;;  %s1633_s2 = inlined_call_operand.vmem [shape: f32[1,128], index: 2, kind: input, shape index: {}]   ;;  %s1634_s3 = inlined_call_operand.hbm [shape: bf16[128,128], index: 3, kind: input, shape index: {}]   ;;  %s1635_s4 = inlined_call_operand.vmem [shape: f32[1,128], index: 4, kind: input, shape index: {}]   ;;  %s1636_s5 = inlined_call_operand.vmem [shape: f32[64,128], index: 5, kind: output, shape index: {}]  }
   0x1   :  { %11 = vsyncpa [#allocation5], 0  ;;  %s29_s20 = sshll.u32 %s1632_s1, 4  ;;  %s1494_s21 = smov [#allocation4]   ;;  %s30_s20 = int_to_ptr.hbm [resolvable:$true] %s29_s20 }
   0x2   :  { %s31_s22 = sshll.u32 %s1494_s21, 4  ;;  %s16_s25 = sshll.u32 %s1631_s0, 4  ;;  %s32_s22 = int_to_ptr.vmem [resolvable:$true] %s31_s22  ;;  %s17_s25 = int_to_ptr.hbm [resolvable:$true] %s16_s25 }
   0x3   :  { %s1495_s26 = smov 64   ;;  %s1496_s27 = smov 4  }
   0x4   :  { %37 = dma.hbm_to_vmem [thread:$0]  %s30_s20, 8000, %s32_s22, [#allocation5], %s1495_s26, %s1495_s26, %s1496_s27  }
   0x5   :  { %s1497_s28 = smov [#allocation2]   ;;  %s44_s7 = sshll.u32 %s1634_s3, 4  ;;  %s45_s7 = int_to_ptr.hbm [resolvable:$true] %s44_s7 }
   0x6   :  { %s18_s29 = sshll.u32 %s1497_s28, 4  ;;  %s1498_s1 = smov 1024   ;;  %s19_s29 = int_to_ptr.vmem [resolvable:$true] %s18_s29 }
   0x7   :  { %24 = dma.hbm_to_vmem [thread:$0]  %s17_s25, 8192, %s19_s29, [#allocation3], %s1498_s1, %s1498_s1, %s1495_s26  }
   0x8   :  { %s1499_s8 = smov [#allocation6]  }
   0x9   :  { %s46_s9 = sshll.u32 %s1499_s8, 4  ;;  %s47_s9 = int_to_ptr.vmem [resolvable:$true] %s46_s9 }
   0xa   :  { %52 = dma.hbm_to_vmem [thread:$0]  %s45_s7, 1024, %s47_s9, [#allocation5], %s1495_s26, %s1495_s26, %s1496_s27  }
   0xb   :  { %1490 = dma.done.wait [#allocation3], 8192  }
   0xc   :  { %1491 = vsyncadd [#allocation3], 4294959104 }
   0xd   :  { %1492 = dma.done.wait [#allocation5], 9024  }
   0xe   :  { %1493 = vsyncadd [#allocation5], 4294958272  ;;  %v1331_v0 = vld [vmem:[#allocation4 + $0x38] sm:$0xff]  ;;  %v1330_v1 = vld [vmem:[#allocation4 + $0x30] sm:$0xff]  ;;  %vm681_vm0 = vcmask 1043456   ;;  %vm668_vm1 = vcmask 850944  }
   0xf   :  { %1394 = vmatpush.bf16.msra.mxu1 %v1331_v0  ;;  %685 = vmatpush.bf16.msra.mxu0 %v1331_v0  ;;  %v1347_v2 = vld [vmem:[#allocation4 + $0xb8] sm:$0xff]  ;;  %v1346_v4 = vld [vmem:[#allocation4 + $0xb0] sm:$0xff]  ;;  %v1329_v6 = vld [vmem:[#allocation4 + $0x28] sm:$0xff] }
  0x10   :  { %v1355_v3 = vld [vmem:[#allocation4 + $0xf8] sm:$0xff]  ;;  %743 = vmatpush.bf16.msra.mxu2 %v1347_v2  ;;  %v1354_v5 = vld [vmem:[#allocation4 + $0xf0] sm:$0xff]  ;;  %v1345_v7 = vld [vmem:[#allocation4 + $0xa8] sm:$0xff] }
  0x11   :  { %772 = vmatpush.bf16.msra.mxu3 %v1355_v3  ;;  %v1353_v8 = vld [vmem:[#allocation4 + $0xe8] sm:$0xff]  ;;  %v1328_v9 = vld [vmem:[#allocation4 + $0x20] sm:$0xff]  ;;  %v1327_v12 = vld [vmem:[#allocation4 + $0x18] sm:$0xff] }
  0x12   :  { %v1344_v10 = vld [vmem:[#allocation4 + $0xa0] sm:$0xff]  ;;  %v1343_v13 = vld [vmem:[#allocation4 + $0x98] sm:$0xff]  ;;  %v1326_v15 = vld [vmem:[#allocation4 + $0x10] sm:$0xff] }
  0x13   :  { %1395 = vmatpush.bf16.msra.mxu1 %v1330_v1  ;;  %686 = vmatpush.bf16.msra.mxu0 %v1330_v1  ;;  %v1352_v11 = vld [vmem:[#allocation4 + $0xe0] sm:$0xff]  ;;  %v1351_v14 = vld [vmem:[#allocation4 + $0xd8] sm:$0xff]  ;;  %v1342_v16 = vld [vmem:[#allocation4 + $0x90] sm:$0xff] }
  0x14   :  { %744 = vmatpush.bf16.msra.mxu2 %v1346_v4  ;;  %v1350_v17 = vld [vmem:[#allocation4 + $0xd0] sm:$0xff]  ;;  %v1325_v18 = vld [vmem:[#allocation4 + $0x8] sm:$0xff]  ;;  %v1324_v21 = vld [vmem:[#allocation4] sm:$0xff] }
  0x15   :  { %773 = vmatpush.bf16.msra.mxu3 %v1354_v5  ;;  %v1341_v19 = vld [vmem:[#allocation4 + $0x88] sm:$0xff]  ;;  %v100_v22 = vld [vmem:[#allocation2 + $0x100] sm:$0xff]  ;;  %v1339_v26 = vld [vmem:[#allocation4 + $0x78] sm:$0xff] }
  0x16   :  { %v1349_v20 = vld [vmem:[#allocation4 + $0xc8] sm:$0xff]  ;;  %v108_v23 = vld [vmem:[#allocation2 + $0x140] sm:$0xff]  ;;  %v1363_v27 = vld [vmem:[#allocation4 + $0x138] sm:$0xff] }
  0x17   :  { %1396 = vmatpush.bf16.msra.mxu1 %v1329_v6  ;;  %687 = vmatpush.bf16.msra.mxu0 %v1329_v6  ;;  %v68_v24 = vld [vmem:[#allocation2] sm:$0xff]  ;;  %v288_v28 = vld [vmem:[#allocation4 + $0x1f0] sm:$0xf]  ;;  %v148_v33 = vpack.c.bf16 %v108_v23, %v100_v22  ;;  %v71_v36 = vld [vmem:[#allocation2 + $0x18] sm:$0xff] }
  0x18   :  { %745 = vmatpush.bf16.msra.mxu2 %v1345_v7  ;;  %v76_v25 = vld [vmem:[#allocation2 + $0x40] sm:$0xff]  ;;  %v70_v31 = vld [vmem:[#allocation2 + $0x10] sm:$0xff]  ;;  %v542_v32 = vunpack.c.l.b16 %v288_v28  ;;  %v79_v37 = vld [vmem:[#allocation2 + $0x58] sm:$0xff] }
  0x19   :  { %774 = vmatpush.bf16.msra.mxu3 %v1353_v8  ;;  %v1340_v29 = vld [vmem:[#allocation4 + $0x80] sm:$0xff]  ;;  %v132_v34 = vpack.c.bf16 %v76_v25, %v68_v24  ;;  %v78_v35 = vld [vmem:[#allocation2 + $0x50] sm:$0xff]  ;;  %v1379_v38 = vld [vmem:[#allocation4 + $0x1b8] sm:$0xff]  ;;  %v135_v43 = vpack.c.bf16 %v79_v37, %v71_v36 }
  0x1a   :  { %v1348_v30 = vld [vmem:[#allocation4 + $0xc0] sm:$0xff]  ;;  %v605_v39 = vpack.c.b16 %v542_v32, %v542_v32  ;;  %v1338_v40 = vld [vmem:[#allocation4 + $0x70] sm:$0xff]  ;;  %v134_v42 = vpack.c.bf16 %v78_v35, %v70_v31  ;;  %v1337_v46 = vld [vmem:[#allocation4 + $0x68] sm:$0xff] }
  0x1b   :  { %1397 = vmatpush.bf16.msra.mxu1 %v1328_v9  ;;  %688 = vmatpush.bf16.msra.mxu0 %v1328_v9  ;;  %v1362_v41 = vld [vmem:[#allocation4 + $0x130] sm:$0xff]  ;;  %v1361_v47 = vld [vmem:[#allocation4 + $0x128] sm:$0xff]  ;;  %v1336_v50 = vld [vmem:[#allocation4 + $0x60] sm:$0xff] }
  0x1c   :  { %746 = vmatpush.bf16.msra.mxu2 %v1344_v10  ;;  %v683_v44 = vsel %vm681_vm0, %v605_v39, 0  ;;  %v1378_v45 = vld [vmem:[#allocation4 + $0x1b0] sm:$0xff]  ;;  %v1385_v48 = vld [vmem:[#allocation4 + $0x1e8] sm:$0xff]  ;;  %v1360_v51 = vld [vmem:[#allocation4 + $0x120] sm:$0xff] }
  0x1d   :  { %775 = vmatpush.bf16.msra.mxu3 %v1352_v11  ;;  %v1377_v49 = vld [vmem:[#allocation4 + $0x1a8] sm:$0xff]  ;;  %v116_v52 = vld [vmem:[#allocation2 + $0x180] sm:$0xff]  ;;  %v1335_v56 = vld [vmem:[#allocation4 + $0x58] sm:$0xff] }
  0x1e   :  { %v124_v53 = vld [vmem:[#allocation2 + $0x1c0] sm:$0xff]  ;;  %v1359_v57 = vld [vmem:[#allocation4 + $0x118] sm:$0xff]  ;;  %v86_v58 = vld [vmem:[#allocation2 + $0x90] sm:$0xff] }
  0x1f   :  { %1398 = vmatpush.bf16.msra.mxu1 %v1327_v12  ;;  %689 = vmatpush.bf16.msra.mxu0 %v1327_v12  ;;  %v84_v54 = vld [vmem:[#allocation2 + $0x80] sm:$0xff]  ;;  %v156_v59 = vpack.c.bf16 %v124_v53, %v116_v52  ;;  %v94_v61 = vld [vmem:[#allocation2 + $0xd0] sm:$0xff]  ;;  %v87_v62 = vld [vmem:[#allocation2 + $0x98] sm:$0xff] }
  0x20   :  { %747 = vmatpush.bf16.msra.mxu2 %v1343_v13  ;;  %v92_v55 = vld [vmem:[#allocation2 + $0xc0] sm:$0xff]  ;;  %v95_v63 = vld [vmem:[#allocation2 + $0xd8] sm:$0xff]  ;;  %v1334_v0 = vld [vmem:[#allocation4 + $0x50] sm:$0xff]  ;;  %v142_v2 = vpack.c.bf16 %v94_v61, %v86_v58 }
  0x21   :  { %776 = vmatpush.bf16.msra.mxu3 %v1351_v14  ;;  %v140_v60 = vpack.c.bf16 %v92_v55, %v84_v54  ;;  %v1358_v1 = vld [vmem:[#allocation4 + $0x110] sm:$0xff]  ;;  %v143_v3 = vpack.c.bf16 %v95_v63, %v87_v62  ;;  %v1384_v4 = vld [vmem:[#allocation4 + $0x1e0] sm:$0xff]  ;;  %v1333_v6 = vld [vmem:[#allocation4 + $0x48] sm:$0xff] }
  0x22   :  { %v1376_v5 = vld [vmem:[#allocation4 + $0x1a0] sm:$0xff]  ;;  %v1357_v7 = vld [vmem:[#allocation4 + $0x108] sm:$0xff]  ;;  %v1383_v8 = vld [vmem:[#allocation4 + $0x1d8] sm:$0xff] }
  0x23   :  { %1399 = vmatpush.bf16.msra.mxu1 %v1326_v15  ;;  %690 = vmatpush.bf16.msra.mxu0 %v1326_v15  ;;  %v1375_v9 = vld [vmem:[#allocation4 + $0x198] sm:$0xff]  ;;  %v1332_v10 = vld [vmem:[#allocation4 + $0x40] sm:$0xff]  ;;  %v69_v13 = vld [vmem:[#allocation2 + $0x8] sm:$0xff] }
  0x24   :  { %748 = vmatpush.bf16.msra.mxu2 %v1342_v16  ;;  %v1356_v11 = vld [vmem:[#allocation4 + $0x100] sm:$0xff]  ;;  %v1371_v12 = vld [vmem:[#allocation4 + $0x178] sm:$0xff]  ;;  %v77_v14 = vld [vmem:[#allocation2 + $0x48] sm:$0xff] }
  0x25   :  { %777 = vmatpush.bf16.msra.mxu3 %v1350_v17  ;;  %v72_v15 = vld [vmem:[#allocation2 + $0x20] sm:$0xff]  ;;  %v1370_v17 = vld [vmem:[#allocation4 + $0x170] sm:$0xff]  ;;  %v103_v22 = vld [vmem:[#allocation2 + $0x118] sm:$0xff] }
  0x26   :  { %v80_v16 = vld [vmem:[#allocation2 + $0x60] sm:$0xff]  ;;  %v111_v23 = vld [vmem:[#allocation2 + $0x158] sm:$0xff]  ;;  %v1369_v24 = vld [vmem:[#allocation4 + $0x168] sm:$0xff] }
  0x27   :  { %1400 = vmatpush.bf16.msra.mxu1 %v1325_v18  ;;  %691 = vmatpush.bf16.msra.mxu0 %v1325_v18  ;;  %v133_v18 = vpack.c.bf16 %v77_v14, %v69_v13  ;;  %v1374_v28 = vld [vmem:[#allocation4 + $0x190] sm:$0xff]  ;;  %v1373_v31 = vld [vmem:[#allocation4 + $0x188] sm:$0xff]  ;;  %v1367_v32 = vld [vmem:[#allocation4 + $0x158] sm:$0xff] }
  0x28   :  { %749 = vmatpush.bf16.msra.mxu2 %v1341_v19  ;;  %v136_v19 = vpack.c.bf16 %v80_v16, %v72_v15  ;;  %v88_v35 = vld [vmem:[#allocation2 + $0xa0] sm:$0xff]  ;;  %v1366_v37 = vld [vmem:[#allocation4 + $0x150] sm:$0xff]  ;;  %v75_v58 = vld [vmem:[#allocation2 + $0x38] sm:$0xff] }
  0x29   :  { %778 = vmatpush.bf16.msra.mxu3 %v1349_v20  ;;  %v102_v20 = vld [vmem:[#allocation2 + $0x110] sm:$0xff]  ;;  %v96_v36 = vld [vmem:[#allocation2 + $0xe0] sm:$0xff]  ;;  %v117_v62 = vld [vmem:[#allocation2 + $0x188] sm:$0xff] }
  0x2a   :  { %v144_v39 = vpack.c.bf16 %v96_v36, %v88_v35  ;;  %v104_v52 = vld [vmem:[#allocation2 + $0x120] sm:$0xff]  ;;  %v125_v63 = vld [vmem:[#allocation2 + $0x1c8] sm:$0xff]  ;;  %v106_v13 = vld [vmem:[#allocation2 + $0x130] sm:$0xff] }
  0x2b   :  { %1401 = vmatpush.bf16.msra.mxu1 %v1324_v21  ;;  %692 = vmatpush.bf16.msra.mxu0 %v1324_v21  ;;  %v110_v21 = vld [vmem:[#allocation2 + $0x150] sm:$0xff]  ;;  %v112_v53 = vld [vmem:[#allocation2 + $0x160] sm:$0xff]  ;;  %v107_v15 = vld [vmem:[#allocation2 + $0x138] sm:$0xff] }
  0x2c   :  { %750 = vmatpush.bf16.msra.mxu2 %v1340_v29  ;;  %v150_v25 = vpack.c.bf16 %v110_v21, %v102_v20  ;;  %v1368_v29 = vld [vmem:[#allocation4 + $0x160] sm:$0xff]  ;;  %v152_v55 = vpack.c.bf16 %v112_v53, %v104_v52  ;;  %v114_v14 = vld [vmem:[#allocation2 + $0x170] sm:$0xff]  ;;  %v115_v16 = vld [vmem:[#allocation2 + $0x178] sm:$0xff] }
  0x2d   :  { %779 = vmatpush.bf16.msra.mxu3 %v1348_v30  ;;  %v1381_v30 = vld [vmem:[#allocation4 + $0x1c8] sm:$0xff] }
  0x2e   :  { %703 = vmatmul.bf16.vlgmr.msra.gmra.mxu1 %v148_v33  ;;  %693 = vmatmul.bf16.vlgmr.msra.gmra.mxu0 %v132_v34  ;;  %v85_v33 = vld [vmem:[#allocation2 + $0x88] sm:$0xff] }
  0x2f   :  { %714 = vmatpush.bf16.msrb.mxu1 %v1339_v26  ;;  %801 = vmatpush.bf16.msrb.mxu0 %v1363_v27  ;;  %v151_v26 = vpack.c.bf16 %v111_v23, %v103_v22  ;;  %v1382_v27 = vld [vmem:[#allocation4 + $0x1d0] sm:$0xff]  ;;  %v93_v34 = vld [vmem:[#allocation2 + $0xc8] sm:$0xff] }
  0x30   :  { %859 = vmatpush.bf16.msrb.mxu2 %v1379_v38  ;;  %780 = vmatmul.bf16.vlgmr.msra.gmra.mxu3 %v135_v43  ;;  %v141_v38 = vpack.c.bf16 %v93_v34, %v85_v33  ;;  %v127_v43 = vld [vmem:[#allocation2 + $0x1d8] sm:$0xff]  ;;  %v97_v20 = vld [vmem:[#allocation2 + $0xe8] sm:$0xff]  ;;  %v122_v22 = vld [vmem:[#allocation2 + $0x1b0] sm:$0xff] }
  0x31   :  { %889 = vmatpush.bf16.msrb.mxu3 %v683_v44  ;;  %751 = vmatmul.bf16.vlgmr.msra.gmra.mxu2 %v134_v42  ;;  %v119_v42 = vld [vmem:[#allocation2 + $0x198] sm:$0xff]  ;;  %v130_v23 = vld [vmem:[#allocation2 + $0x1f0] sm:$0xff]  ;;  %v121_v35 = vld [vmem:[#allocation2 + $0x1a8] sm:$0xff] }
  0x32   :  { %v129_v36 = vld [vmem:[#allocation2 + $0x1e8] sm:$0xff] }
  0x33   :  { %715 = vmatpush.bf16.msrb.mxu1 %v1338_v40  ;;  %802 = vmatpush.bf16.msrb.mxu0 %v1362_v41  ;;  %v118_v40 = vld [vmem:[#allocation2 + $0x190] sm:$0xff] }
  0x34   :  { %860 = vmatpush.bf16.msrb.mxu2 %v1378_v45  ;;  %v126_v41 = vld [vmem:[#allocation2 + $0x1d0] sm:$0xff]  ;;  %v1372_v45 = vld [vmem:[#allocation4 + $0x180] sm:$0xff] }
  0x35   :  { %890 = vmatpush.bf16.msrb.mxu3 %v1385_v48  ;;  %v158_v44 = vpack.c.bf16 %v126_v41, %v118_v40  ;;  %v1380_v48 = vld [vmem:[#allocation4 + $0x1c0] sm:$0xff] }
  0x37   :  { %716 = vmatpush.bf16.msrb.mxu1 %v1337_v46  ;;  %803 = vmatpush.bf16.msrb.mxu0 %v1361_v47  ;;  %v159_v46 = vpack.c.bf16 %v127_v43, %v119_v42  ;;  %v1365_v47 = vld [vmem:[#allocation4 + $0x148] sm:$0xff] }
  0x38   :  { %861 = vmatpush.bf16.msrb.mxu2 %v1377_v49  ;;  %v1364_v49 = vld [vmem:[#allocation4 + $0x140] sm:$0xff] }
  0x39   :  { %891 = vmatpush.bf16.msrb.mxu3 %v1384_v4  ;;  %v90_v4 = vld [vmem:[#allocation2 + $0xb0] sm:$0xff] }
  0x3b   :  { %717 = vmatpush.bf16.msrb.mxu1 %v1336_v50  ;;  %804 = vmatpush.bf16.msrb.mxu0 %v1360_v51  ;;  %v101_v50 = vld [vmem:[#allocation2 + $0x108] sm:$0xff] }
  0x3c   :  { %862 = vmatpush.bf16.msrb.mxu2 %v1376_v5  ;;  %v109_v51 = vld [vmem:[#allocation2 + $0x148] sm:$0xff]  ;;  %v98_v5 = vld [vmem:[#allocation2 + $0xf0] sm:$0xff] }
  0x3d   :  { %892 = vmatpush.bf16.msrb.mxu3 %v1383_v8  ;;  %v149_v54 = vpack.c.bf16 %v109_v51, %v101_v50  ;;  %v146_v8 = vpack.c.bf16 %v98_v5, %v90_v4  ;;  %v1391_v4 = vld [vmem:[#allocation6 + $0x28] sm:$0xff]  ;;  %v1390_v5 = vld [vmem:[#allocation6 + $0x20] sm:$0xff] }
  0x3e   :  { %708 = vmatmul.bf16.gmra.mxu1 %v156_v59  ;;  %698 = vmatmul.bf16.gmra.mxu0 %v140_v60  ;;  %v83_v59 = vld [vmem:[#allocation2 + $0x78] sm:$0xff] }
  0x3f   :  { %718 = vmatpush.bf16.msrb.mxu1 %v1335_v56  ;;  %805 = vmatpush.bf16.msrb.mxu0 %v1359_v57  ;;  %v74_v56 = vld [vmem:[#allocation2 + $0x30] sm:$0xff]  ;;  %v139_v61 = vpack.c.bf16 %v83_v59, %v75_v58 }
  0x40   :  { %785 = vmatmul.bf16.gmra.mxu3 %v143_v3  ;;  %863 = vmatpush.bf16.msrb.mxu2 %v1375_v9  ;;  %v82_v57 = vld [vmem:[#allocation2 + $0x70] sm:$0xff] }
  0x41   :  { %756 = vmatmul.bf16.gmra.mxu2 %v142_v2  ;;  %893 = vmatpush.bf16.msrb.mxu3 %v1382_v27  ;;  %v138_v60 = vpack.c.bf16 %v82_v57, %v74_v56  ;;  %v157_v2 = vpack.c.bf16 %v125_v63, %v117_v62  ;;  %v1392_v63 = vld [vmem:[#allocation6 + $0x30] sm:$0xff] }
  0x43   :  { %719 = vmatpush.bf16.msrb.mxu1 %v1334_v0  ;;  %806 = vmatpush.bf16.msrb.mxu0 %v1358_v1  ;;  %v120_v0 = vld [vmem:[#allocation2 + $0x1a0] sm:$0xff] }
  0x44   :  { %864 = vmatpush.bf16.msrb.mxu2 %v1374_v28  ;;  %v128_v1 = vld [vmem:[#allocation2 + $0x1e0] sm:$0xff]  ;;  %v105_v28 = vld [vmem:[#allocation2 + $0x128] sm:$0xff] }
  0x45   :  { %894 = vmatpush.bf16.msrb.mxu3 %v1381_v30  ;;  %v160_v3 = vpack.c.bf16 %v128_v1, %v120_v0 }
  0x47   :  { %720 = vmatpush.bf16.msrb.mxu1 %v1333_v6  ;;  %807 = vmatpush.bf16.msrb.mxu0 %v1357_v7  ;;  %v91_v6 = vld [vmem:[#allocation2 + $0xb8] sm:$0xff] }
  0x48   :  { %865 = vmatpush.bf16.msrb.mxu2 %v1373_v31  ;;  %v99_v7 = vld [vmem:[#allocation2 + $0xf8] sm:$0xff] }
  0x49   :  { %895 = vmatpush.bf16.msrb.mxu3 %v1380_v48  ;;  %v147_v9 = vpack.c.bf16 %v99_v7, %v91_v6 }
  0x4b   :  { %721 = vmatpush.bf16.msrb.mxu1 %v1332_v10  ;;  %808 = vmatpush.bf16.msrb.mxu0 %v1356_v11  ;;  %v73_v10 = vld [vmem:[#allocation2 + $0x28] sm:$0xff] }
  0x4c   :  { %866 = vmatpush.bf16.msrb.mxu2 %v1372_v45  ;;  %v81_v11 = vld [vmem:[#allocation2 + $0x68] sm:$0xff]  ;;  %v1556_v45 = vld [vmem:[%s1633_s2] ss:$0 sm:$0xff] }
  0x4e   :  { %722 = vmatmul.bf16.vlgmr.msrb.gmra.mxu1 %v133_v18  ;;  %809 = vmatmul.bf16.vlgmr.msrb.gmra.mxu0 %v136_v19  ;;  %v155_v18 = vpack.c.bf16 %v115_v16, %v107_v15  ;;  %v89_v19 = vld [vmem:[#allocation2 + $0xa8] sm:$0xff] }
  0x4f   :  { %830 = vmatpush.bf16.msra.mxu1 %v1371_v12  ;;  %v137_v12 = vpack.c.bf16 %v81_v11, %v73_v10  ;;  %v145_v21 = vpack.c.bf16 %v97_v20, %v89_v19  ;;  %v1389_v11 = vld [vmem:[#allocation6 + $0x18] sm:$0xff]  ;;  %v1388_v15 = vld [vmem:[#allocation6 + $0x10] sm:$0xff] }
  0x50   :  { %790 = vmatmul.bf16.gmra.mxu3 %v151_v26  ;;  %v162_v26 = vpack.c.bf16 %v130_v23, %v122_v22 }
  0x51   :  { %761 = vmatmul.bf16.gmra.mxu2 %v150_v25  ;;  %v131_v25 = vld [vmem:[#allocation2 + $0x1f8] sm:$0xff] }
  0x53   :  { %831 = vmatpush.bf16.msra.mxu1 %v1370_v17  ;;  %v154_v17 = vpack.c.bf16 %v114_v14, %v106_v13 }
  0x57   :  { %832 = vmatpush.bf16.msra.mxu1 %v1369_v24  ;;  %v123_v24 = vld [vmem:[#allocation2 + $0x1b8] sm:$0xff] }
  0x58   :  { %v163_v27 = vpack.c.bf16 %v131_v25, %v123_v24 }
  0x5b   :  { %833 = vmatpush.bf16.msra.mxu1 %v1368_v29  ;;  %v113_v29 = vld [vmem:[#allocation2 + $0x168] sm:$0xff] }
  0x5c   :  { %v153_v30 = vpack.c.bf16 %v113_v29, %v105_v28 }
  0x5e   :  { %727 = vmatmul.bf16.gmra.mxu1 %v141_v38  ;;  %814 = vmatmul.bf16.gmra.mxu0 %v144_v39 }
  0x5f   :  { %834 = vmatpush.bf16.msra.mxu1 %v1367_v32 }
  0x60   :  { %795 = vmatmul.bf16.gmra.mxu3 %v159_v46 }
  0x61   :  { %766 = vmatmul.bf16.gmra.mxu2 %v158_v44 }
  0x63   :  { %835 = vmatpush.bf16.msra.mxu1 %v1366_v37  ;;  %v161_v37 = vpack.c.bf16 %v129_v36, %v121_v35 }
  0x67   :  { %836 = vmatpush.bf16.msra.mxu1 %v1365_v47 }
  0x6b   :  { %837 = vmatpush.bf16.msra.mxu1 %v1364_v49 }
  0x6e   :  { %732 = vmatmul.bf16.gmra.mxu1 %v149_v54  ;;  %819 = vmatmul.bf16.gmra.mxu0 %v152_v55  ;;  %v1393_v55 = vld [vmem:[#allocation6 + $0x38] sm:$0xff] }
  0x6f   :  { %997 = vmatpush.bf16.msra.mxu0 %v1393_v55  ;;  %1402 = vmatpush.bf16.msra.mxu2 %v1393_v55 }
  0x70   :  { %1288 = vmatmul.msk.bf16.vlgmr.msrb.gmra.mxu3 %vm668_vm1, %v139_v61 }
  0x71   :  { %867 = vmatmul.bf16.vlgmr.msrb.gmra.mxu2 %v138_v60 }
  0x73   :  { %998 = vmatpush.bf16.msra.mxu0 %v1392_v63  ;;  %1403 = vmatpush.bf16.msra.mxu2 %v1392_v63 }
  0x77   :  { %999 = vmatpush.bf16.msra.mxu0 %v1391_v4  ;;  %1404 = vmatpush.bf16.msra.mxu2 %v1391_v4 }
  0x7b   :  { %1000 = vmatpush.bf16.msra.mxu0 %v1390_v5  ;;  %1405 = vmatpush.bf16.msra.mxu2 %v1390_v5 }
  0x7e   :  { %737 = vmatmul.bf16.gmra.mxu1 %v157_v2  ;;  %824 = vmatmul.bf16.gmra.mxu0 %v160_v3 }
  0x7f   :  { %1001 = vmatpush.bf16.msra.mxu0 %v1389_v11  ;;  %1406 = vmatpush.bf16.msra.mxu2 %v1389_v11 }
  0x80   :  { %1289 = vmatmul.msk.bf16.gmra.mxu3 %vm668_vm1, %v147_v9 }
  0x81   :  { %872 = vmatmul.bf16.gmra.mxu2 %v146_v8 }
  0x83   :  { %1002 = vmatpush.bf16.msra.mxu0 %v1388_v15  ;;  %1407 = vmatpush.bf16.msra.mxu2 %v1388_v15 }
  0x8e   :  { %838 = vmatmul.bf16.vlgmr.msra.gmra.mxu1 %v137_v12 }
  0x90   :  { %1290 = vmatmul.msk.bf16.gmra.mxu3 %vm668_vm1, %v155_v18  ;;  %v1387_v18 = vld [vmem:[#allocation6 + $0x8] sm:$0xff] }
  0x91   :  { %877 = vmatmul.bf16.gmra.mxu2 %v154_v17  ;;  %1003 = vmatpush.bf16.msra.mxu0 %v1387_v18 }
  0x92   :  { %1408 = vmatpush.bf16.msra.mxu2 %v1387_v18 }
  0x9e   :  { %843 = vmatmul.bf16.gmra.mxu1 %v145_v21  ;;  %v1386_v21 = vld [vmem:[#allocation6] sm:$0xff] }
  0x9f   :  { %1004 = vmatpush.bf16.msra.mxu0 %v1386_v21  ;;  %1409 = vmatpush.bf16.msra.mxu2 %v1386_v21 }
  0xa0   :  { %1291 = vmatmul.msk.bf16.gmra.mxu3 %vm668_vm1, %v163_v27 }
  0xa1   :  { %882 = vmatmul.bf16.gmra.mxu2 %v162_v26 }
  0xab   :  { %v704_v31 = vpop.f32.mrf.mxu1  ;;  %v694_v41 = vpop.f32.mrf.mxu0 }
  0xac   :  { %v695_v46 = vadd.f32 %v1556_v45, %v694_v41  ;;  %v705_v6 = vadd.f32 %v1556_v45, %v704_v31 }
  0xae   :  { %848 = vmatmul.bf16.gmra.mxu1 %v153_v30 }
  0xb3   :  { %v1543_v32 = vpop.f32.mrf.mxu1  ;;  %v781_v34 = vpop.f32.mrf.mxu3 }
  0xb4   :  { %v752_v33 = vpop.f32.mrf.mxu2  ;;  %v696_v49 = vpop.f32.mrf.mxu0  ;;  %v707_v11 = vadd.f32 %v1556_v45, %v1543_v32 }
  0xb5   :  { %v697_v29 = vadd.f32 %v1556_v45, %v696_v49 }
  0xbb   :  { %v1545_v38 = vpop.f32.mrf.mxu1  ;;  %v1549_v40 = vpop.f32.mrf.mxu3 }
  0xbc   :  { %v1547_v39 = vpop.f32.mrf.mxu2  ;;  %v699_v56 = vpop.f32.mrf.mxu0  ;;  %v710_v22 = vadd.f32 %v1556_v45, %v1545_v38 }
  0xbd   :  { %v700_v58 = vadd.f32 %v1556_v45, %v699_v56 }
  0xbe   :  { %853 = vmatmul.bf16.gmra.mxu1 %v161_v37 }
  0xc3   :  { %v1551_v42 = vpop.f32.mrf.mxu1  ;;  %v786_v44 = vpop.f32.mrf.mxu3 }
  0xc4   :  { %v757_v43 = vpop.f32.mrf.mxu2  ;;  %v701_v13 = vpop.f32.mrf.mxu0 }
  0xcb   :  { %v723_v47 = vpop.f32.mrf.mxu1  ;;  %v1561_v52 = vpop.f32.mrf.mxu3 }
  0xcc   :  { %v724_v48 = vadd.f32 %v723_v47, %v695_v46  ;;  %v1559_v50 = vpop.f32.mrf.mxu2  ;;  %v810_v20 = vpop.f32.mrf.mxu0  ;;  %v702_v46 = vadd.f32 %v1556_v45, %v701_v13 }
  0xce   :  { %v753_v51 = vadd.f32 %v752_v33, %v724_v48 }
  0xd0   :  { %v1563_v53 = vadd.f32 %v781_v34, %v753_v51 }
  0xd2   :  { %v811_v38 = vadd.f32 %v810_v20, %v1563_v53 }
  0xd3   :  { %v725_v54 = vpop.f32.mrf.mxu1  ;;  %v791_v59 = vpop.f32.mrf.mxu3 }
  0xd4   :  { %v762_v57 = vpop.f32.mrf.mxu2  ;;  %v812_v30 = vpop.f32.mrf.mxu0  ;;  %v726_v33 = vadd.f32 %v725_v54, %v697_v29 }
  0xd6   :  { %v755_v35 = vadd.f32 %v1547_v39, %v726_v33 }
  0xdb   :  { %v728_v60 = vpop.f32.mrf.mxu1  ;;  %v1570_v3 = vpop.f32.mrf.mxu3 }
  0xdc   :  { %v729_v61 = vadd.f32 %v728_v60, %v700_v58  ;;  %v1568_v1 = vpop.f32.mrf.mxu2  ;;  %v815_v41 = vpop.f32.mrf.mxu0 }
  0xde   :  { %v758_v62 = vadd.f32 %v757_v43, %v729_v61  ;;  %v784_v43 = vadd.f32 %v1549_v40, %v755_v35  ;;  %v712_v35 = vadd.f32 %v1556_v45, %v1551_v42 }
  0xe0   :  { %v1566_v0 = vadd.f32 %v786_v44, %v758_v62  ;;  %v813_v47 = vadd.f32 %v812_v30, %v784_v43 }
  0xe2   :  { %v816_v40 = vadd.f32 %v815_v41, %v1566_v0 }
  0xe3   :  { %v730_v2 = vpop.f32.mrf.mxu1  ;;  %v796_v10 = vpop.f32.mrf.mxu3 }
  0xe4   :  { %v767_v8 = vpop.f32.mrf.mxu2  ;;  %v731_v54 = vadd.f32 %v730_v2, %v702_v46  ;;  %v817_v39 = vpop.f32.mrf.mxu0 }
  0xe6   :  { %v760_v60 = vadd.f32 %v1559_v50, %v731_v54 }
  0xe8   :  { %v789_v5 = vadd.f32 %v1561_v52, %v760_v60 }
  0xea   :  { %v818_v2 = vadd.f32 %v817_v39, %v789_v5 }
  0xeb   :  { %v733_v7 = vpop.f32.mrf.mxu1  ;;  %v1577_v19 = vpop.f32.mrf.mxu3 }
  0xec   :  { %v734_v9 = vadd.f32 %v733_v7, %v705_v6  ;;  %v1575_v17 = vpop.f32.mrf.mxu2 }
  0xee   :  { %v763_v12 = vadd.f32 %v762_v57, %v734_v9 }
  0xf0   :  { %v1573_v14 = vadd.f32 %v791_v59, %v763_v12 }
  0xf3   :  { %v735_v16 = vpop.f32.mrf.mxu1  ;;  %v897_v28 = vpop.f32.mrf.mxu3 }
  0xf4   :  { %v868_v26 = vpop.f32.mrf.mxu2  ;;  %v736_v12 = vadd.f32 %v735_v16, %v707_v11 }
  0xf6   :  { %v765_v21 = vadd.f32 %v1568_v1, %v736_v12 }
  0xfb   :  { %v738_v23 = vpop.f32.mrf.mxu1  ;;  %v899_v37 = vpop.f32.mrf.mxu3 }
  0xfc   :  { %v739_v24 = vadd.f32 %v738_v23, %v710_v22  ;;  %v870_v34 = vpop.f32.mrf.mxu2 }
  0xfe   :  { %v768_v25 = vadd.f32 %v767_v8, %v739_v24  ;;  %v820_v8 = vpop.f32.mrf.mxu0 }
 0x100   :  { %v1581_v27 = vadd.f32 %v796_v10, %v768_v25  ;;  %v821_v25 = vadd.f32 %v820_v8, %v1573_v14 }
 0x103   :  { %v1584_v31 = vpop.f32.mrf.mxu1  ;;  %v902_v56 = vpop.f32.mrf.mxu3 }
 0x104   :  { %v873_v51 = vpop.f32.mrf.mxu2 }
 0x106   :  { %v822_v23 = vpop.f32.mrf.mxu0 }
 0x10b   :  { %v839_v36 = vpop.f32.mrf.mxu1  ;;  %v904_v7 = vpop.f32.mrf.mxu3 }
 0x10c   :  { %v840_v44 = vadd.f32 %v839_v36, %v811_v38  ;;  %v875_v4 = vpop.f32.mrf.mxu2 }
 0x10e   :  { %v869_v48 = vadd.f32 %v868_v26, %v840_v44  ;;  %v825_v36 = vpop.f32.mrf.mxu0 }
 0x110   :  { %v898_v57 = vadd.f32 %v897_v28, %v869_v48  ;;  %v794_v28 = vadd.f32 %v1570_v3, %v765_v21  ;;  %v826_v48 = vadd.f32 %v825_v36, %v1581_v27 }
 0x112   :  { %v917_v53 = vmax.f32 %v898_v57, 0.0  ;;  %v823_v16 = vadd.f32 %v822_v23, %v794_v28 }
 0x113   :  { %v841_v49 = vpop.f32.mrf.mxu1  ;;  %v907_v20 = vpop.f32.mrf.mxu3 }
 0x114   :  { %v842_v55 = vadd.f32 %v841_v49, %v813_v47  ;;  %v878_v18 = vpop.f32.mrf.mxu2 }
 0x116   :  { %v871_v58 = vadd.f32 %v870_v34, %v842_v55  ;;  %v827_v45 = vpop.f32.mrf.mxu0 }
 0x118   :  { %v900_v59 = vadd.f32 %v899_v37, %v871_v58  ;;  %v741_v37 = vadd.f32 %v1584_v31, %v712_v35 }
 0x11a   :  { %v918_v61 = vmax.f32 %v900_v59, 0.0  ;;  %v770_v43 = vadd.f32 %v1575_v17, %v741_v37 }
 0x11b   :  { %v844_v62 = vpop.f32.mrf.mxu1  ;;  %v909_v33 = vpop.f32.mrf.mxu3 }
 0x11c   :  { %v925_v63 = vpack.c.bf16 %v918_v61, %v917_v53  ;;  %v845_v6 = vadd.f32 %v844_v62, %v816_v40  ;;  %v880_v32 = vpop.f32.mrf.mxu2  ;;  %v799_v55 = vadd.f32 %v1577_v19, %v770_v43  ;;  %v1417_v19 = vld [vmem:[%s1635_s4] ss:$0 sm:$0xff] }
 0x11e   :  { %1005 = vmatmul.bf16.vlgmr.msra.gmra.mxu0 %v925_v63  ;;  %v874_v9 = vadd.f32 %v873_v51, %v845_v6 }
 0x120   :  { %v903_v15 = vadd.f32 %v902_v56, %v874_v9  ;;  %v828_v56 = vadd.f32 %v827_v45, %v799_v55 }
 0x122   :  { %v919_v52 = vmax.f32 %v903_v15, 0.0 }
 0x123   :  { %v846_v10 = vpop.f32.mrf.mxu1  ;;  %v912_v51 = vpop.f32.mrf.mxu3 }
 0x124   :  { %v847_v50 = vadd.f32 %v846_v10, %v818_v2  ;;  %v883_v46 = vpop.f32.mrf.mxu2 }
 0x126   :  { %v876_v13 = vadd.f32 %v875_v4, %v847_v50 }
 0x128   :  { %v905_v0 = vadd.f32 %v904_v7, %v876_v13 }
 0x12a   :  { %v920_v22 = vmax.f32 %v905_v0, 0.0 }
 0x12b   :  { %v849_v24 = vpop.f32.mrf.mxu1  ;;  %v914_v59 = vpop.f32.mrf.mxu3 }
 0x12c   :  { %v926_v26 = vpack.c.bf16 %v920_v22, %v919_v52  ;;  %v850_v29 = vadd.f32 %v849_v24, %v821_v25  ;;  %v885_v58 = vpop.f32.mrf.mxu2 }
 0x12e   :  { %1010 = vmatmul.bf16.gmra.mxu0 %v926_v26  ;;  %v879_v30 = vadd.f32 %v878_v18, %v850_v29 }
 0x130   :  { %v908_v41 = vadd.f32 %v907_v20, %v879_v30 }
 0x132   :  { %v921_v3 = vmax.f32 %v908_v41, 0.0 }
 0x133   :  { %v851_v34 = vpop.f32.mrf.mxu1 }
 0x134   :  { %v852_v1 = vadd.f32 %v851_v34, %v823_v16 }
 0x136   :  { %v881_v38 = vadd.f32 %v880_v32, %v852_v1 }
 0x138   :  { %v910_v14 = vadd.f32 %v909_v33, %v881_v38 }
 0x13a   :  { %v922_v44 = vmax.f32 %v910_v14, 0.0 }
 0x13b   :  { %v854_v47 = vpop.f32.mrf.mxu1 }
 0x13c   :  { %v927_v49 = vpack.c.bf16 %v922_v44, %v921_v3  ;;  %v855_v42 = vadd.f32 %v854_v47, %v826_v48 }
 0x13e   :  { %1015 = vmatmul.bf16.gmra.mxu0 %v927_v49  ;;  %v884_v31 = vadd.f32 %v883_v46, %v855_v42 }
 0x140   :  { %v913_v39 = vadd.f32 %v912_v51, %v884_v31 }
 0x142   :  { %v923_v53 = vmax.f32 %v913_v39, 0.0 }
 0x143   :  { %v856_v54 = vpop.f32.mrf.mxu1 }
 0x144   :  { %v857_v57 = vadd.f32 %v856_v54, %v828_v56 }
 0x146   :  { %v886_v17 = vadd.f32 %v885_v58, %v857_v57 }
 0x148   :  { %v915_v60 = vadd.f32 %v914_v59, %v886_v17 }
 0x14a   :  { %v924_v61 = vmax.f32 %v915_v60, 0.0 }
 0x14c   :  { %v928_v62 = vpack.c.bf16 %v924_v61, %v923_v53 }
 0x14e   :  { %1020 = vmatmul.bf16.vlgmr.msra.gmra.mxu2 %v928_v62 }
 0x19b   :  { %v1006_v27 = vpop.f32.mrf.mxu0 }
 0x19c   :  { %v1007_v40 = vadd.f32 %v1417_v19, %v1006_v27 }
 0x19e   :  { %1026 = vst [vmem:[%s1636_s5] sm:$0xff] %v1007_v40 }
 0x1a3   :  { %v1008_v63 = vpop.f32.mrf.mxu0 }
 0x1a4   :  { %v1009_v4 = vadd.f32 %v1417_v19, %v1008_v63 }
 0x1a6   :  { %1027 = vst [vmem:[%s1636_s5 + $0x8] sm:$0xff] %v1009_v4 }
 0x1ab   :  { %v1011_v5 = vpop.f32.mrf.mxu0 }
 0x1ac   :  { %v1012_v6 = vadd.f32 %v1417_v19, %v1011_v5 }
 0x1ae   :  { %1028 = vst [vmem:[%s1636_s5 + $0x10] sm:$0xff] %v1012_v6 }
 0x1b3   :  { %v1013_v7 = vpop.f32.mrf.mxu0 }
 0x1b4   :  { %v1014_v8 = vadd.f32 %v1417_v19, %v1013_v7 }
 0x1b6   :  { %1029 = vst [vmem:[%s1636_s5 + $0x18] sm:$0xff] %v1014_v8 }
 0x1bb   :  { %v1016_v2 = vpop.f32.mrf.mxu0 }
 0x1bc   :  { %v1017_v9 = vadd.f32 %v1417_v19, %v1016_v2 }
 0x1be   :  { %1030 = vst [vmem:[%s1636_s5 + $0x20] sm:$0xff] %v1017_v9 }
 0x1c3   :  { %v1018_v10 = vpop.f32.mrf.mxu0 }
 0x1c4   :  { %v1019_v11 = vadd.f32 %v1417_v19, %v1018_v10 }
 0x1c6   :  { %1031 = vst [vmem:[%s1636_s5 + $0x28] sm:$0xff] %v1019_v11 }
 0x1d1   :  { %v1021_v50 = vpop.f32.mrf.mxu2 }
 0x1d2   :  { %v1022_v12 = vadd.f32 %v1417_v19, %v1021_v50 }
 0x1d4   :  { %1032 = vst [vmem:[%s1636_s5 + $0x30] sm:$0xff] %v1022_v12 }
 0x1d9   :  { %v1023_v13 = vpop.f32.mrf.mxu2 }
 0x1da   :  { %v1024_v15 = vadd.f32 %v1417_v19, %v1023_v13 }
 0x1dc   :  { %1033 = vst [vmem:[%s1636_s5 + $0x38] sm:$0xff] %v1024_v15 }
 0x1dd   :  { %1038 = vsyncpa [#allocation3], 1 }
 0x1de   :  { %1039 = vsyncpa [#allocation5], 1 }

</bundles_post_ra>
